<compile_context>
chip_gen: v7x
topology: tpu7x:2x2x1
jax: 0.10.0
libtpu: 0.0.40
codegen_flags: <defaults>
</compile_context>

<pallas_src>
import functools

import numpy as np
import jax
import jax.numpy as jnp
from jax.experimental import pallas as pl
from jax.experimental.pallas import tpu as pltpu


def _ldam_kernel(xt_ref, t_ref, m_ref, lsum_ref, cnt_ref, *, s, n_rows):
    i = pl.program_id(0)
    c, tn = xt_ref.shape                                   # classes on sublanes, samples on lanes

    x = xt_ref[...].astype(jnp.float32)                    # (C, TN) f32
    t = t_ref[...]                                         # (1, TN) int32
    m = m_ref[...]                                         # (C, 1)  f32

    # Per-sample validity: inside the real [0, N) range AND not ignore_index.
    sample = jax.lax.broadcasted_iota(jnp.int32, (1, tn), 1) + i * tn
    valid = jnp.logical_and(t != -100, sample < n_rows)    # (1, TN) bool

    cls = jax.lax.broadcasted_iota(jnp.int32, (c, tn), 0)  # class id per sublane
    is_tgt = cls == t                                      # (C, TN) bool (sublane bcast of t)

    # z = s * (x - margin at the target class only)
    z = s * (x - jnp.where(is_tgt, m, 0.0))                # (C, TN) f32

    # stable log-softmax over classes == sublane (axis-0) reductions
    zmax = jnp.max(z, axis=0, keepdims=True)               # (1, TN)
    sume = jnp.sum(jnp.exp(z - zmax), axis=0, keepdims=True)
    lse = zmax + jnp.log(sume)                             # (1, TN)

    # target logit with margin applied: single select + reduce
    zt = s * jnp.sum(jnp.where(is_tgt, x - m, 0.0), axis=0, keepdims=True)

    # Mask with a select (NOT a multiply): garbage in the ragged tail may be
    # NaN/Inf and 0 * NaN would poison the partial sums.
    loss = jnp.where(valid, lse - zt, 0.0)                 # (1, TN)
    valid_f = valid.astype(jnp.float32)

    # Per-grid-step partials: each step owns its own lane-dense (1,128) block,
    # so the grid axis can be "parallel" (v7x megacore); final divide is a tiny
    # jnp epilogue outside the kernel.
    lsum_ref[...] = jnp.full(lsum_ref.shape, jnp.sum(loss), jnp.float32)
    cnt_ref[...] = jnp.full(cnt_ref.shape, jnp.sum(valid_f), jnp.float32)


def _pick_vmem_limit():
    """Per-generation scoped-VMEM limit: <= half of physical VMEM
    (v5e/v6e: 128 MiB -> 64 MiB; v7x: 64 MiB -> 32 MiB)."""
    cap = None
    try:
        cap = getattr(pltpu.get_tpu_info(), "vmem_capacity_bytes", None)
    except Exception:
        cap = None
    if not cap:
        cap = 64 * 1024 * 1024          # conservative (v7x-sized) default
    return int(min(64 * 1024 * 1024, max(16 * 1024 * 1024, cap // 2)))


def _choose_tile_n(n, c, itemsize, vmem_limit_bytes):
    """Samples (lanes) per grid step.

    Sized by bytes-per-step (~2 MiB of x per step to amortize the ~0.35us
    per-step overhead) subject to a VMEM budget of ~half the vmem limit
    (double-buffered native-dtype x + int32 target tiles plus ~8 live
    (C, tile_n) f32 temporaries), and capped near N/2 so grid_n >= 2 and both
    v7x TensorCores get work.  Multiple of 128 (lane axis)."""
    per_lane = c * (2 * itemsize + 8 * 4) + 2 * 2 * 4 + 16
    vmem_cap = (vmem_limit_bytes // 2) // max(per_lane, 1)
    byte_tile = (2 * 1024 * 1024) // max(c * itemsize, 1)
    tile = min(vmem_cap, byte_tile)
    if n >= 1024:
        half = (((n + 1) // 2) + 127) // 128 * 128
        tile = min(tile, half)
    tile = max(512, (tile // 128) * 128)
    return int(tile)


def ldam_loss(x, target, m_list, s=30.0, tile_n=None):
    """x: [N, C] logits (any float dtype), target: [N] int (-100 = ignore),
    m_list: [C] f32.  Returns scalar f32 mean LDAM cross-entropy."""
    # TODO(synk): class `weight` argument of F.cross_entropy not supported (module uses weight=None).
    N, C = x.shape
    itemsize = jnp.dtype(x.dtype).itemsize
    vmem_limit = _pick_vmem_limit()
    if tile_n is None:
        tile_n = _choose_tile_n(N, C, itemsize, vmem_limit)
    if tile_n >= N:
        tile_n = N                       # single block == full array dims (always legal)
    grid_n = pl.cdiv(N, tile_n)

    # Transpose so samples are lane-dense inside the kernel; keep native dtype
    # (no wrapper-side f32 upcast -> one streaming pass at native width).
    xT = jnp.swapaxes(x, 0, 1)                       # (C, N)
    t2d = target.reshape(1, N).astype(jnp.int32)     # (1, N)
    m2d = m_list.reshape(C, 1).astype(jnp.float32)   # (C, 1), resident across steps

    cost = pl.CostEstimate(
        flops=int(10 * N * C),
        transcendentals=int(N * C + N),
        bytes_accessed=int(N * C * itemsize + N * 4 + C * 4 + 2 * grid_n * 128 * 4),
    )

    kernel = functools.partial(_ldam_kernel, s=float(s), n_rows=int(N))

    lsum, cnt = pl.pallas_call(
        kernel,
        out_shape=(
            jax.ShapeDtypeStruct((1, grid_n * 128), jnp.float32),
            jax.ShapeDtypeStruct((1, grid_n * 128), jnp.float32),
        ),
        grid_spec=pltpu.PrefetchScalarGridSpec(
            num_scalar_prefetch=0,
            grid=(grid_n,),
            in_specs=[
                pl.BlockSpec((C, tile_n), lambda i: (0, i)),   # logits (classes x samples)
                pl.BlockSpec((1, tile_n), lambda i: (0, i)),   # targets
                pl.BlockSpec((C, 1), lambda i: (0, 0)),        # m_list (resident)
            ],
            out_specs=[
                pl.BlockSpec((1, 128), lambda i: (0, i)),      # per-step loss sum
                pl.BlockSpec((1, 128), lambda i: (0, i)),      # per-step valid count
            ],
        ),
        compiler_params=pltpu.CompilerParams(
            dimension_semantics=("parallel",),     # lets v7x shard steps over 2 TCs
            vmem_limit_bytes=int(vmem_limit),
        ),
        cost_estimate=cost,
    )(xT, t2d, m2d)

    # Tiny epilogue: every lane of a step's block carries the same partial sum.
    loss_sum = lsum.reshape(grid_n, 128)[:, 0].sum()
    count = cnt.reshape(grid_n, 128)[:, 0].sum()
    # Note: if every target is -100, count==0 and this yields NaN, matching PyTorch.
    return loss_sum / count


def _reference(x, target, m_list, s=30.0):
    # pure-JAX reference of the PyTorch forward (for sanity check)
    x = x.astype(jnp.float32)
    valid = target != -100
    onehot = jax.nn.one_hot(jnp.where(valid, target, 0), x.shape[1], dtype=jnp.float32)
    margin = (onehot * m_list[None, :]).sum(-1, keepdims=True)
    z = s * (x - margin * onehot)
    lse = jax.scipy.special.logsumexp(z, axis=-1)
    zt = (z * onehot).sum(-1)
    per = (lse - zt) * valid.astype(jnp.float32)
    return per.sum() / valid.astype(jnp.float32).sum()


if __name__ == "__main__":
    # module __init__ parameters (deterministic, built in-script)
    cls_num_list = np.array([50, 100, 20, 10, 200, 30, 5, 80], dtype=np.float64)
    max_m, s = 0.5, 30.0
    m_np = 1.0 / np.sqrt(np.sqrt(cls_num_list))
    m_np = m_np * (max_m / np.max(m_np))
    m_list = jnp.asarray(m_np, dtype=jnp.float32)          # (C,)
    C = cls_num_list.shape[0]

    key = jax.random.PRNGKey(0)

    # Case 1: small NER-like shapes, batch=2, seq=8 -> N=16 samples, C=8 classes
    N1 = 2 * 8
    kx, kt, key = jax.random.split(key, 3)
    x1 = jax.random.normal(kx, (N1, C), dtype=jnp.float32)
    t1 = jax.random.randint(kt, (N1,), 0, C, dtype=jnp.int32)
    t1 = t1.at[3].set(-100).at[11].set(-100)               # padding-like ignores
    out1 = jax.block_until_ready(ldam_loss(x1, t1, m_list, s=s))
    ref1 = _reference(x1, t1, m_list, s=s)
    assert jnp.allclose(out1, ref1, rtol=1e-4, atol=1e-3), (out1, ref1)

    # Case 2: multi-step grid with a ragged tail (exercises in-kernel tail mask)
    # and a native bf16 logit stream.
    N2 = 300
    kx2, kt2 = jax.random.split(key)
    x2 = jax.random.normal(kx2, (N2, C), dtype=jnp.bfloat16)
    t2 = jax.random.randint(kt2, (N2,), 0, C, dtype=jnp.int32)
    t2 = jnp.where(jax.random.bernoulli(kt2, 0.1, (N2,)), -100, t2)
    out2 = jax.block_until_ready(ldam_loss(x2, t2, m_list, s=s, tile_n=128))
    ref2 = _reference(x2, t2, m_list, s=s)
    assert jnp.allclose(out2, ref2, rtol=1e-3, atol=2e-2), (out2, ref2)

    print("KERNEL_OK")
</pallas_src>

<mosaic_0001>
module attributes {stable_mosaic.version = 11 : i64} {
  func.func @_ldam_kernel(%arg0: i32, %arg1: memref<8x16xf32, #tpu.memory_space<vmem>>, %arg2: memref<1x16xi32, #tpu.memory_space<vmem>>, %arg3: memref<8x1xf32, #tpu.memory_space<vmem>>, %arg4: memref<1x128xf32, #tpu.memory_space<vmem>>, %arg5: memref<1x128xf32, #tpu.memory_space<vmem>>) attributes {dimension_semantics = [#tpu.dimension_semantics<parallel>], iteration_bounds = array<i64: 1>, scalar_prefetch = 0 : i64, scratch_operands = 0 : i64, tpu.core_type = #tpu.core_type<tc>, window_params = [{transform_indices = @transform_0, window_bounds = array<i64: 8, 16>}, {transform_indices = @transform_1, window_bounds = array<i64: 1, 16>}, {pipeline_mode = #tpu.pipeline_mode<synchronous>, transform_indices = @transform_2, window_bounds = array<i64: 8, 1>}, {transform_indices = @transform_3, window_bounds = array<i64: 1, 128>}, {transform_indices = @transform_4, window_bounds = array<i64: 1, 128>}]} {
    %c0 = arith.constant 0 : index
    %c0_0 = arith.constant 0 : index
    %0 = vector.load %arg1[%c0, %c0_0] : memref<8x16xf32, #tpu.memory_space<vmem>>, vector<8x16xf32>
    %c0_1 = arith.constant 0 : index
    %c0_2 = arith.constant 0 : index
    %1 = vector.load %arg2[%c0_1, %c0_2] : memref<1x16xi32, #tpu.memory_space<vmem>>, vector<1x16xi32>
    %c0_3 = arith.constant 0 : index
    %c0_4 = arith.constant 0 : index
    %2 = vector.load %arg3[%c0_3, %c0_4] : memref<8x1xf32, #tpu.memory_space<vmem>>, vector<8x1xf32>
    %3 = tpu.iota {dimensions = array<i32: 1>} : vector<1x16xi32>
    %c16_i32 = arith.constant 16 : i32
    %4 = arith.muli %arg0, %c16_i32 : i32
    %5 = vector.broadcast %4 : i32 to vector<1x16xi32>
    %6 = arith.addi %3, %5 : vector<1x16xi32>
    %c-100_i32 = arith.constant -100 : i32
    %7 = vector.broadcast %c-100_i32 : i32 to vector<1x16xi32>
    %8 = arith.cmpi ne, %1, %7 : vector<1x16xi32>
    %c16_i32_5 = arith.constant 16 : i32
    %9 = vector.broadcast %c16_i32_5 : i32 to vector<1x16xi32>
    %10 = arith.cmpi slt, %6, %9 : vector<1x16xi32>
    %11 = arith.andi %8, %10 : vector<1x16xi1>
    %12 = tpu.iota {dimensions = array<i32: 0>} : vector<8x16xi32>
    %13 = vector.broadcast %1 : vector<1x16xi32> to vector<8x16xi32>
    %14 = arith.cmpi eq, %12, %13 : vector<8x16xi32>
    %cst = arith.constant 0.000000e+00 : f32
    %15 = vector.shape_cast %2 : vector<8x1xf32> to vector<8x1xf32>
    %16 = vector.broadcast %15 : vector<8x1xf32> to vector<8x16xf32>
    %17 = vector.broadcast %cst : f32 to vector<8x16xf32>
    %18 = arith.select %14, %16, %17 : vector<8x16xi1>, vector<8x16xf32>
    %19 = arith.subf %0, %18 : vector<8x16xf32>
    %cst_6 = arith.constant 3.000000e+01 : f32
    %20 = vector.broadcast %cst_6 : f32 to vector<8x16xf32>
    %21 = arith.mulf %20, %19 : vector<8x16xf32>
    %cst_7 = arith.constant dense<0xFF800000> : vector<16xf32>
    %22 = vector.multi_reduction <maximumf>, %21, %cst_7 [0] : vector<8x16xf32> to vector<16xf32>
    %23 = vector.shape_cast %22 : vector<16xf32> to vector<1x16xf32>
    %24 = vector.broadcast %23 : vector<1x16xf32> to vector<8x16xf32>
    %25 = arith.subf %21, %24 : vector<8x16xf32>
    %26 = math.exp %25 : vector<8x16xf32>
    %cst_8 = arith.constant dense<0.000000e+00> : vector<16xf32>
    %27 = vector.multi_reduction <add>, %26, %cst_8 [0] : vector<8x16xf32> to vector<16xf32>
    %28 = vector.shape_cast %27 : vector<16xf32> to vector<1x16xf32>
    %29 = math.log %28 : vector<1x16xf32>
    %30 = arith.addf %23, %29 : vector<1x16xf32>
    %31 = vector.broadcast %2 : vector<8x1xf32> to vector<8x16xf32>
    %32 = arith.subf %0, %31 : vector<8x16xf32>
    %cst_9 = arith.constant 0.000000e+00 : f32
    %33 = vector.broadcast %cst_9 : f32 to vector<8x16xf32>
    %34 = arith.select %14, %32, %33 : vector<8x16xi1>, vector<8x16xf32>
    %cst_10 = arith.constant dense<0.000000e+00> : vector<16xf32>
    %35 = vector.multi_reduction <add>, %34, %cst_10 [0] : vector<8x16xf32> to vector<16xf32>
    %36 = vector.shape_cast %35 : vector<16xf32> to vector<1x16xf32>
    %cst_11 = arith.constant 3.000000e+01 : f32
    %37 = vector.broadcast %cst_11 : f32 to vector<1x16xf32>
    %38 = arith.mulf %37, %36 : vector<1x16xf32>
    %39 = arith.subf %30, %38 : vector<1x16xf32>
    %cst_12 = arith.constant 0.000000e+00 : f32
    %40 = vector.broadcast %cst_12 : f32 to vector<1x16xf32>
    %41 = arith.select %11, %39, %40 : vector<1x16xi1>, vector<1x16xf32>
    %42 = arith.extui %11 : vector<1x16xi1> to vector<1x16xi32>
    %43 = arith.sitofp %42 : vector<1x16xi32> to vector<1x16xf32>
    %44 = vector.shape_cast %41 : vector<1x16xf32> to vector<1x1x16xf32>
    %cst_13 = arith.constant dense<0.000000e+00> : vector<1xf32>
    %45 = vector.multi_reduction <add>, %44, %cst_13 [1, 2] : vector<1x1x16xf32> to vector<1xf32>
    %46 = vector.shape_cast %45 : vector<1xf32> to vector<1x1x1xf32>
    %47 = vector.extract %46[0, 0, 0] : f32 from vector<1x1x1xf32>
    %48 = vector.broadcast %47 : f32 to vector<1x128xf32>
    %c0_14 = arith.constant 0 : index
    %c0_15 = arith.constant 0 : index
    %49 = vector.load %arg4[%c0_14, %c0_15] : memref<1x128xf32, #tpu.memory_space<vmem>>, vector<1x128xf32>
    tpu.vector_store %arg4[%c0_14, %c0_15], %48 {strides = array<i32>} : memref<1x128xf32, #tpu.memory_space<vmem>>, vector<1x128xf32>,
    %50 = vector.shape_cast %43 : vector<1x16xf32> to vector<1x1x16xf32>
    %cst_16 = arith.constant dense<0.000000e+00> : vector<1xf32>
    %51 = vector.multi_reduction <add>, %50, %cst_16 [1, 2] : vector<1x1x16xf32> to vector<1xf32>
    %52 = vector.shape_cast %51 : vector<1xf32> to vector<1x1x1xf32>
    %53 = vector.extract %52[0, 0, 0] : f32 from vector<1x1x1xf32>
    %54 = vector.broadcast %53 : f32 to vector<1x128xf32>
    %c0_17 = arith.constant 0 : index
    %c0_18 = arith.constant 0 : index
    %55 = vector.load %arg5[%c0_17, %c0_18] : memref<1x128xf32, #tpu.memory_space<vmem>>, vector<1x128xf32>
    tpu.vector_store %arg5[%c0_17, %c0_18], %54 {strides = array<i32>} : memref<1x128xf32, #tpu.memory_space<vmem>>, vector<1x128xf32>,
    return
  }
  func.func @transform_0(%arg0: i32) -> (i32, i32) {
    %c0_i32 = arith.constant 0 : i32
    %c0_i32_0 = arith.constant 0 : i32
    return %c0_i32, %arg0 : i32, i32
  }
  func.func @transform_1(%arg0: i32) -> (i32, i32) {
    %c0_i32 = arith.constant 0 : i32
    %c0_i32_0 = arith.constant 0 : i32
    return %c0_i32, %arg0 : i32, i32
  }
  func.func @transform_2(%arg0: i32) -> (i32, i32) {
    %c0_i32 = arith.constant 0 : i32
    %c0_i32_0 = arith.constant 0 : i32
    %c0_i32_1 = arith.constant 0 : i32
    return %c0_i32, %c0_i32_0 : i32, i32
  }
  func.func @transform_3(%arg0: i32) -> (i32, i32) {
    %c0_i32 = arith.constant 0 : i32
    %c0_i32_0 = arith.constant 0 : i32
    return %c0_i32, %arg0 : i32, i32
  }
  func.func @transform_4(%arg0: i32) -> (i32, i32) {
    %c0_i32 = arith.constant 0 : i32
    %c0_i32_0 = arith.constant 0 : i32
    return %c0_i32, %arg0 : i32, i32
  }
}

</mosaic_0001>

<bundles_post_ra>
// kernel: tpu_custom_call.1
= control target key start
LH: loop header
LB: loop body
LE: loop exit
PB: predicated region body
PF: predicated region fallthrough
CT: control target
= control target key end

     0   :  { %10 = vsyncpa [#allocation3], 0  ;;  %v21_v1 = vlaneseq  ;;  %v194_v2 = vmov 0   ;;  %s276_s0 = inlined_call_operand.vmem [shape: f32[8,16], index: 0, kind: input, shape index: {}]   ;;  %s277_s1 = inlined_call_operand.vmem [shape: s32[1,16], index: 1, kind: input, shape index: {}]   ;;  %s278_s2 = inlined_call_operand.vmem [shape: f32[8,1], index: 2, kind: input, shape index: {}]   ;;  %s279_s3 = inlined_call_operand.hbm [shape: f32[1,128], index: 3, kind: output, shape index: {0}]   ;;  %s280_s4 = inlined_call_operand.hbm [shape: f32[1,128], index: 4, kind: output, shape index: {1}]  }
   0x1   :  { %v20_v0 = vld [vmem:[%s278_s2] sm:$0xff]  ;;  %141 = vset.pattern.permute.xlu0 %v194_v2 }
   0x2   :  { %11 = vsyncpa [#allocation5], 0  ;;  %38 = vperm.xlu0 %141, %v20_v0   ;;  %v30_v3 = vshrl.u32 %v21_v1, 7  ;;  %v19_v4 = vld [vmem:[%s277_s1] sm:$0x1]  ;;  %v22_v7 = vand.u32 127, %v21_v1 }
   0x3   :  { %vm26_vm1 = vcmp.ne.s32.totalorder %v19_v4, 4294967196  ;;  %vm79_vm3 = vcmask 122880   ;;  %v195_v9 = vmov 0.0   ;;  %v18_v12 = vld [vmem:[%s276_s0] sm:$0xff]  ;;  %vm44_vm5 = vcmask 130048   ;;  %s196_s0 = smov [#allocation2]  }
   0x4   :  { %v33_v5 = vsub.s32 0, %v30_v3  ;;  %vm27_vm2 = vcmp.lt.s32.totalorder %v22_v7, 16  ;;  %s110_s19 = sshll.u32 %s196_s0, 4  ;;  %s197_s20 = smov [#allocation4]   ;;  %s111_s19 = int_to_ptr.vmem [resolvable:$true] %s110_s19 }
   0x5   :  { %vm229_vm4 = vmand %vm26_vm1, %vm27_vm2  ;;  %s120_s21 = sshll.u32 %s197_s20, 4  ;;  %s146_s24 = scalar_lea.vmem %s111_s19, 16  ;;  %s244_s21 = int_to_ptr.vmem [resolvable:$true] %s120_s21 }
   0x6   :  { %v34_v6 = vrot.slane %v19_v4, %v33_v5  ;;  %v132_v10 = vsel %vm229_vm4, 1.0, %v195_v9  ;;  %p147_p0 = scmp.ne.s32.totalorder %s111_s19, %s146_s24  ;;  %s150_s25 = scalar_lea.vmem %s111_s19, 32 }
   0x7   :  { %v92_v11 = vsel %vm79_vm3, %v132_v10, 0.0  ;;  %p151_p1 = scmp.lt.s32.totalorder %s111_s19, %s111_s19  ;;  %p152_p2 = scmp.lt.s32.totalorder %s150_s25, %s146_s24 }
   0x8   :  { %vm35_vm0 = vcmp.eq.s32.totalorder %v30_v3, %v34_v6  ;;  %93 = vadd.xlane.f32.xlu1 %v92_v11 }
   0x9   :  { %p153_p3 = por %p152_p2, %p151_p1 }
   0xb   :  { %p154_p4 = pnand %p153_p3, %p147_p0 }
  0x81   :  { %v39_v13 = vpop.permute.xlu0 %38 }
  0x82   :  { %v41_v14 = vsel %vm35_vm0, %v39_v13, 0.0  ;;  %v65_v26 = vsub.f32 %v18_v12, %v39_v13 }
  0x83   :  { %v42_v15 = vsub.f32 %v18_v12, %v41_v14 }
  0x84   :  { %v66_v27 = vsel %vm35_vm0, %v65_v26, 0.0 }
  0x85   :  { %v43_v16 = vmul.f32 30.0, %v42_v15  ;;  %v67_v29 = vsel %vm44_vm5, %v66_v27, 0.0 }
  0x86   :  { %v68_v32 = vrot.slane %v67_v29, 4 }
  0x87   :  { %v45_v17 = vsel %vm44_vm5, %v43_v16, -inf }
  0x88   :  { %v46_v18 = vrot.slane %v45_v17, 4  ;;  %v69_v35 = vadd.f32 %v68_v32, %v67_v29 }
  0x8a   :  { %v47_v19 = vmax.f32 %v45_v17, %v46_v18  ;;  %v70_v38 = vrot.slane %v69_v35, 2 }
  0x8c   :  { %v48_v20 = vrot.slane %v47_v19, 2  ;;  %v71_v40 = vadd.f32 %v70_v38, %v69_v35 }
  0x8e   :  { %v49_v21 = vmax.f32 %v47_v19, %v48_v20  ;;  %v72_v41 = vrot.slane %v71_v40, 1 }
  0x90   :  { %v50_v22 = vrot.slane %v49_v21, 1  ;;  %v73_v42 = vadd.f32 %v72_v41, %v71_v40 }
  0x92   :  { %v51_v23 = vmax.f32 %v49_v21, %v50_v22  ;;  %v74_v46 = vmul.f32 30.0, %v73_v42 }
  0x94   :  { %v52_v24 = vsub.f32 %v43_v16, %v51_v23 }
  0x95   :  { %v94_v50 = vpop.xlane.xlu1 %93 }
  0x96   :  { %v53_v25 = vmul.f32 1.442695, %v52_v24  ;;  %v95_v51 = vrot.slane %v94_v50, 4 }
  0x98   :  { %142 = vpow2.f32 %v53_v25  ;;  %v96_v52 = vadd.f32 %v95_v51, %v94_v50 }
  0x9a   :  { %v97_v53 = vrot.slane %v96_v52, 2 }
  0x9c   :  { %v98_v57 = vadd.f32 %v97_v53, %v96_v52 }
  0x9e   :  { %v99_v60 = vrot.slane %v98_v57, 1 }
  0xa0   :  { %v100_v63 = vadd.f32 %v99_v60, %v98_v57 }
  0xa2   :  { %v143_v28 = vpop.eup %142 }
  0xa3   :  { %v55_v30 = vsel %vm44_vm5, %v143_v28, 0.0 }
  0xa4   :  { %v56_v31 = vrot.slane %v55_v30, 4 }
  0xa6   :  { %v57_v33 = vadd.f32 %v56_v31, %v55_v30 }
  0xa8   :  { %v58_v34 = vrot.slane %v57_v33, 2 }
  0xaa   :  { %v59_v36 = vadd.f32 %v58_v34, %v57_v33 }
  0xac   :  { %v60_v37 = vrot.slane %v59_v36, 1 }
  0xae   :  { %v61_v39 = vadd.f32 %v60_v37, %v59_v36 }
  0xb0   :  { %144 = vlog2.f32 %v61_v39 }
  0xba   :  { %v145_v43 = vpop.eup %144 }
  0xbb   :  { %v63_v44 = vmul.f32 0.6931472, %v145_v43 }
  0xbd   :  { %v64_v45 = vadd.f32 %v63_v44, %v51_v23 }
  0xbf   :  { %v75_v47 = vsub.f32 %v64_v45, %v74_v46 }
  0xc1   :  { %v76_v48 = vsel %vm229_vm4, %v75_v47, 0.0 }
  0xc2   :  { %v80_v49 = vsel %vm79_vm3, %v76_v48, 0.0 }
  0xc3   :  { %81 = vadd.xlane.f32.xlu0 %v80_v49 }
 0x150   :  { %v82_v54 = vpop.xlane.xlu0 %81 }
 0x151   :  { %v83_v55 = vrot.slane %v82_v54, 4 }
 0x153   :  { %v84_v56 = vadd.f32 %v83_v55, %v82_v54 }
 0x155   :  { %v85_v58 = vrot.slane %v84_v56, 2 }
 0x157   :  { %v86_v59 = vadd.f32 %v85_v58, %v84_v56 }
 0x159   :  { %v87_v61 = vrot.slane %v86_v59, 1 }
 0x15b   :  { %v88_v62 = vadd.f32 %v87_v61, %v86_v59 }
 0x15d   :  { %133 = vpush %v88_v62 }
 0x15e   :  { %135 = vpush %v100_v63 }
 0x18e   :  { %s134_s22 = spop %133 }
 0x18f   :  { %v90_v0 = vstv %s134_s22  ;;  %s136_s23 = spop %135 }
 0x190   :  { %91 = vst [vmem:[#allocation2] sm:$0x1] %v90_v0  ;;  %v102_v1 = vstv %s136_s23 }
 0x191   :  { %103 = vst [vmem:[#allocation4] sm:$0x1] %v102_v1 }
 0x192   :  { %157 = shalt.err (!%p154_p4)
}
 0x193   :  { %s158_s28 = scalar_lea.hbm %s279_s3, 16 }
 0x194   :  { %p159_p5 = scmp.ne.s32.totalorder %s279_s3, %s158_s28  ;;  %p162_p6 = scmp.lt.u32.totalorder %s158_s28, %s279_s3 }
 0x196   :  { %p164_p7 = pnand %p162_p6, %p159_p5 }
 0x198   :  { %167 = shalt.err (!%p164_p7)
}
 0x199   :  { %113 = dma.vmem_to_hbm [thread:$0]  %s111_s19, 16, %s279_s3, [#allocation3]  }
 0x19a   :  { %s168_s9 = scalar_lea.vmem %s244_s21, 16  ;;  %s172_s10 = scalar_lea.vmem %s244_s21, 32 }
 0x19b   :  { %p169_p8 = scmp.ne.s32.totalorder %s244_s21, %s168_s9  ;;  %p173_p9 = scmp.lt.s32.totalorder %s244_s21, %s244_s21 }
 0x19c   :  { %p174_p10 = scmp.lt.s32.totalorder %s172_s10, %s168_s9 }
 0x19e   :  { %p175_p11 = por %p174_p10, %p173_p9 }
 0x1a0   :  { %p176_p12 = pnand %p175_p11, %p169_p8 }
 0x1a2   :  { %179 = shalt.err (!%p176_p12)
}
 0x1a3   :  { %s180_s13 = scalar_lea.hbm %s280_s4, 16 }
 0x1a4   :  { %p181_p13 = scmp.ne.s32.totalorder %s280_s4, %s180_s13  ;;  %p184_p0 = scmp.lt.u32.totalorder %s180_s13, %s280_s4 }
 0x1a6   :  { %p186_p1 = pnand %p184_p0, %p181_p13 }
 0x1a8   :  { %189 = shalt.err (!%p186_p1)
}
 0x1a9   :  { %123 = dma.vmem_to_hbm [thread:$0]  %s244_s21, 16, %s280_s4, [#allocation5]  }
 0x1aa   :  { %190 = dma.done.wait [#allocation3], 16  }
 0x1ab   :  { %191 = vsyncadd [#allocation3], 4294967280 }
 0x1ac   :  { %192 = dma.done.wait [#allocation5], 16  }
 0x1ad   :  { %193 = vsyncadd [#allocation5], 4294967280 }
 0x1ae   :  { %130 = vsyncpa [#allocation3], 1 }
 0x1af   :  { %131 = vsyncpa [#allocation5], 1 }

</bundles_post_ra>
